<compile_context>
chip_gen: v6e
topology: v6e:2x2x1
jax: 0.10.0
libtpu: 0.0.40
codegen_flags: <defaults>
</compile_context>

<pallas_src>
import functools

import jax
import jax.numpy as jnp
from jax import lax
from jax.experimental import pallas as pl
from jax.experimental.pallas import tpu as pltpu


def _round_up(x, m):
    return (x + m - 1) // m * m


def _combined_weight(w3_oihw, w5_oihw):
    """Fold both stride-2 convs into one 3x3 stride-1 conv over the 4C phase tensor.

    Returns Wm of shape (3, 4*C, 3*C):  Wm[di, (hp, wp, cin), dj*C + cout].
    """
    C = w3_oihw.shape[0]
    w3 = jnp.transpose(w3_oihw, (2, 3, 1, 0)).astype(jnp.float32)   # (kh, kw, cin, cout)
    w5 = jnp.transpose(w5_oihw, (2, 3, 1, 0)).astype(jnp.float32)
    wc = jnp.zeros((3, 3, 2, 2, C, C), jnp.float32)                 # (di, dj, hp, wp, ci, co)
    # 3x3, stride 2, pad 1: padded-by-2 row = 2*oh + kh + 1 = 2*(oh + di) + hp
    for kh in range(3):
        for kw in range(3):
            di, hp = (kh + 1) // 2, (kh + 1) % 2
            dj, wp = (kw + 1) // 2, (kw + 1) % 2
            wc = wc.at[di, dj, hp, wp].add(w3[kh, kw])
    # 5x5, stride 2, pad 2: padded-by-2 row = 2*oh + kh = 2*(oh + di) + hp
    for kh in range(5):
        for kw in range(5):
            di, hp = kh // 2, kh % 2
            dj, wp = kw // 2, kw % 2
            wc = wc.at[di, dj, hp, wp].add(w5[kh, kw])
    wc = wc.reshape(3, 3, 4 * C, C)                                  # (di, dj, 4C, C)
    # dj-merge: (di, 4C, dj, C) -> (di, 4C, 3C); column group dj holds column tap dj.
    return jnp.transpose(wc, (0, 2, 1, 3)).reshape(3, 4 * C, 3 * C)


def _chip_budgets():
    """(target body-tile bytes, vmem_limit_bytes) per TPU generation."""
    kind = ""
    try:
        kind = jax.devices()[0].device_kind.lower()
    except Exception:  # pragma: no cover - defensive
        pass
    if ("v5 lite" in kind or "v5e" in kind or "v6" in kind) and "v7" not in kind:
        return 6 << 20, 96 << 20          # 128 MiB-VMEM chips: go big
    return 3 << 20, 48 << 20              # v7x (64 MiB / TC) and unknown: stay safe


def _pick_row_tile(h_out, n_batch, wq, c4, itemsize, target_bytes):
    """Row tile sized to the VMEM budget, with enough grid steps to shard/pipeline."""
    per_row = max(1, wq * c4 * itemsize)
    th = max(1, min(h_out, target_bytes // per_row))
    min_steps = 4                          # megacore load balance + pipeline overlap
    if n_batch * (-(-h_out // th)) < min_steps:
        want_tiles = max(1, -(-min_steps // n_batch))
        th = max(1, -(-h_out // want_tiles))
    return int(th)


def _downsample_kernel(body_ref, halo0_ref, halo1_ref, w_ref, b_ref, o_ref, acc_ref,
                       *, th, wq, w_out, c):
    # body_ref : (1, TH, Wq, 4C)   phase rows [r*TH, r*TH + TH)
    # halo*_ref: (1, 1,  Wq, 4C)   phase rows  r*TH + TH, r*TH + TH + 1
    # w_ref    : (3, 4C, 3C)       merged 3x3 "valid" conv weight (dj folded into N)
    # b_ref    : (1, C)            b3 + b5 (f32)
    # o_ref    : (1, TH, w_out, C)
    # acc_ref  : (TH*Wq, 3C)       f32 scratch accumulator
    c4 = 4 * c
    f32 = jnp.float32
    rows = th * wq

    body = body_ref[0]                       # (TH, Wq, 4C)
    h0 = halo0_ref[0, 0]                     # (Wq, 4C)  window row TH
    h1 = halo1_ref[0, 0]                     # (Wq, 4C)  window row TH + 1

    # di = 0 : output row i <- window row i          (all body rows)
    acc_ref[...] = jnp.dot(body.reshape(rows, c4), w_ref[0],
                           preferred_element_type=f32)
    # di = 1 : output row i <- window row i + 1      (body[1:] then halo0)
    if th > 1:
        acc_ref[0:rows - wq] += jnp.dot(body[1:th].reshape(rows - wq, c4), w_ref[1],
                                        preferred_element_type=f32)
    acc_ref[rows - wq:rows] += jnp.dot(h0, w_ref[1], preferred_element_type=f32)
    # di = 2 : output row i <- window row i + 2      (body[2:], then halo0, halo1)
    if th > 2:
        acc_ref[0:rows - 2 * wq] += jnp.dot(body[2:th].reshape(rows - 2 * wq, c4),
                                            w_ref[2], preferred_element_type=f32)
    if th > 1:
        acc_ref[rows - 2 * wq:rows - wq] += jnp.dot(h0, w_ref[2],
                                                    preferred_element_type=f32)
    acc_ref[rows - wq:rows] += jnp.dot(h1, w_ref[2], preferred_element_type=f32)

    # dj column taps: the merged matmul produced [dj=0 | dj=1 | dj=2] output-channel
    # groups.  Shift groups 1/2 by 1/2 phase columns with XLU rolls; the wrapped tail
    # only lands in columns >= w_out, which the single aligned slice below drops.
    a = acc_ref[...]                          # (TH*Wq, 3C) f32
    full = (a[:, 0:c]
            + pltpu.roll(a[:, c:2 * c], rows - 1, axis=0)       # == shift by -1
            + pltpu.roll(a[:, 2 * c:3 * c], rows - 2, axis=0)   # == shift by -2
            + b_ref[...])                                        # (1, C) broadcasts
    o_ref[0] = full.reshape(th, wq, c)[:, :w_out, :].astype(o_ref.dtype)


def downsample(x_nchw, w3_oihw, w5_oihw, b3, b5, temb=None, cemb=None, *,
               row_tile=None, compute_dtype=jnp.bfloat16, out_dtype=None):
    """Pallas implementation of DownSample.forward. NCHW in, NCHW out."""
    del temb, cemb                            # unused, exactly as in PyTorch
    N, C, H, W = x_nchw.shape
    assert H % 2 == 0 and W % 2 == 0, "phase-split layout assumes even H, W"
    h_out, w_out = H // 2, W // 2
    c4, c3 = 4 * C, 3 * C
    cdt = jnp.dtype(compute_dtype)
    odt = jnp.dtype(out_dtype) if out_dtype is not None else x_nchw.dtype

    # Phase-tensor width, padded to the sublane-packing multiple of the compute dtype
    # (8 rows/f32, 16 rows/bf16) so in-kernel flattens stay layout-preserving.
    sub = {4: 8, 2: 16, 1: 32}.get(cdt.itemsize, 8)
    wq = _round_up(w_out + 2, sub)

    # --- row tiling (cdiv: no divisor requirement) --------------------------------
    target_bytes, vmem_limit = _chip_budgets()
    if row_tile is None:
        row_tile = _pick_row_tile(h_out, N, wq, c4, cdt.itemsize, target_bytes)
    th = int(row_tile)
    assert 1 <= th <= h_out, (th, h_out)
    n_tiles = -(-h_out // th)
    h_pad = n_tiles * th                      # padded output rows (sliced off below)
    hq = h_pad + 2                            # phase rows incl. 2-row bottom halo

    # --- layout glue: pad once, ONE reshape/transpose into the phase layout -------
    pad_b = 2 * hq - H - 2                    # bottom pad (>= 2), zeros
    pad_r = 2 * wq - W - 2                    # right pad  (>= 2), zeros
    xp = jnp.pad(x_nchw, ((0, 0), (0, 0), (2, pad_b), (2, pad_r)))
    z = (xp.reshape(N, C, hq, 2, wq, 2)
           .transpose(0, 2, 4, 3, 5, 1)       # (n, i, j, hp, wp, c)
           .reshape(N, hq, wq, c4)
           .astype(cdt))
    wm = _combined_weight(w3_oihw, w5_oihw).astype(cdt)          # (3, 4C, 3C)
    bias = (b3 + b5).astype(jnp.float32).reshape(1, C)

    kernel = functools.partial(_downsample_kernel, th=th, wq=wq, w_out=w_out, c=C)

    out_nhwc = pl.pallas_call(
        kernel,
        out_shape=jax.ShapeDtypeStruct((N, h_pad, w_out, C), odt),
        grid=(N, n_tiles),
        in_specs=[
            # TH-row body of the window
            pl.BlockSpec((1, th, wq, c4), lambda n, r: (n, r, 0, 0)),
            # 2-row bottom halo, delivered as two 1-row views of the same array
            pl.BlockSpec((1, 1, wq, c4), lambda n, r: (n, (r + 1) * th, 0, 0)),
            pl.BlockSpec((1, 1, wq, c4), lambda n, r: (n, (r + 1) * th + 1, 0, 0)),
            # weights / bias: constant index map -> fetched into VMEM once
            pl.BlockSpec((3, c4, c3), lambda n, r: (0, 0, 0)),
            pl.BlockSpec((1, C), lambda n, r: (0, 0)),
        ],
        out_specs=pl.BlockSpec((1, th, w_out, C), lambda n, r: (n, r, 0, 0)),
        scratch_shapes=[pltpu.VMEM((th * wq, c3), jnp.float32)],
        compiler_params=pltpu.CompilerParams(
            dimension_semantics=("parallel", "parallel"),
            vmem_limit_bytes=int(vmem_limit),
        ),
    )(z, z, z, wm, bias)

    out_nhwc = out_nhwc[:, :h_out]            # drop padded output rows (if any)
    return jnp.transpose(out_nhwc, (0, 3, 1, 2))   # NHWC -> NCHW


def downsample_ref(x_nchw, w3, w5, b3, b5):
    """Pure-JAX reference matching PyTorch semantics (NCHW / OIHW)."""
    dn = ("NCHW", "OIHW", "NCHW")
    y3 = lax.conv_general_dilated(x_nchw, w3, (2, 2), [(1, 1), (1, 1)],
                                  dimension_numbers=dn)
    y5 = lax.conv_general_dilated(x_nchw, w5, (2, 2), [(2, 2), (2, 2)],
                                  dimension_numbers=dn)
    return y3 + b3[None, :, None, None] + y5 + b5[None, :, None, None]


if __name__ == "__main__":
    N, C, H, W = 2, 4, 16, 16

    key = jax.random.PRNGKey(0)
    kx, kw3, kw5, kb3, kb5, kt, kc = jax.random.split(key, 7)

    x = jax.random.normal(kx, (N, C, H, W), dtype=jnp.float32)
    # deterministic synthetic parameters (shapes from nn.Conv2d(in_ch, in_ch, k))
    w3 = jax.random.normal(kw3, (C, C, 3, 3), dtype=jnp.float32) * (1.0 / (C * 9) ** 0.5)
    w5 = jax.random.normal(kw5, (C, C, 5, 5), dtype=jnp.float32) * (1.0 / (C * 25) ** 0.5)
    b3 = jax.random.normal(kb3, (C,), dtype=jnp.float32) * 0.1
    b5 = jax.random.normal(kb5, (C,), dtype=jnp.float32) * 0.1
    # temb / cemb exist in the forward signature but are unused
    temb = jax.random.normal(kt, (N, 32), dtype=jnp.float32)
    cemb = jax.random.normal(kc, (N, 32), dtype=jnp.float32)

    ref = downsample_ref(x, w3, w5, b3, b5)

    # 1) f32 compute, auto row tile -> tight tolerance
    out = jax.block_until_ready(
        downsample(x, w3, w5, b3, b5, temb, cemb, compute_dtype=jnp.float32))
    assert out.shape == (N, C, H // 2, W // 2), out.shape
    assert jnp.allclose(out, ref, atol=1e-4, rtol=1e-4), float(jnp.abs(out - ref).max())

    # 2) forced small / non-dividing row tiles -> multi-tile halo + cdiv-padding paths
    for rt in (1, 2, 3):
        out_t = jax.block_until_ready(
            downsample(x, w3, w5, b3, b5, temb, cemb, row_tile=rt,
                       compute_dtype=jnp.float32))
        assert jnp.allclose(out_t, ref, atol=1e-4, rtol=1e-4), (
            rt, float(jnp.abs(out_t - ref).max()))

    # 3) default bf16 compute path (f32 accumulation) -> loose tolerance
    out_bf = jax.block_until_ready(downsample(x, w3, w5, b3, b5, temb, cemb))
    assert jnp.allclose(out_bf, ref, atol=1e-1, rtol=1e-1), float(jnp.abs(out_bf - ref).max())

    print("KERNEL_OK")
</pallas_src>

<mosaic_0001>
module attributes {stable_mosaic.version = 11 : i64} {
  func.func @_downsample_kernel(%arg0: i32, %arg1: i32, %arg2: memref<1x4x16x16xf32, #tpu.memory_space<vmem>>, %arg3: memref<1x1x16x16xf32, #tpu.memory_space<vmem>>, %arg4: memref<1x1x16x16xf32, #tpu.memory_space<vmem>>, %arg5: memref<3x16x12xf32, #tpu.memory_space<vmem>>, %arg6: memref<1x4xf32, #tpu.memory_space<vmem>>, %arg7: memref<1x4x8x4xf32, #tpu.memory_space<vmem>>, %arg8: memref<64x12xf32, #tpu.memory_space<vmem>>) attributes {dimension_semantics = [#tpu.dimension_semantics<parallel>, #tpu.dimension_semantics<parallel>], iteration_bounds = array<i64: 2, 2>, scalar_prefetch = 0 : i64, scratch_operands = 1 : i64, tpu.core_type = #tpu.core_type<tc>, window_params = [{transform_indices = @transform_0, window_bounds = array<i64: 1, 4, 16, 16>}, {transform_indices = @transform_1, window_bounds = array<i64: 1, 1, 16, 16>}, {transform_indices = @transform_2, window_bounds = array<i64: 1, 1, 16, 16>}, {pipeline_mode = #tpu.pipeline_mode<synchronous>, transform_indices = @transform_3, window_bounds = array<i64: 3, 16, 12>}, {pipeline_mode = #tpu.pipeline_mode<synchronous>, transform_indices = @transform_4, window_bounds = array<i64: 1, 4>}, {transform_indices = @transform_5, window_bounds = array<i64: 1, 4, 8, 4>}]} {
    %c0 = arith.constant 0 : index
    %c0_0 = arith.constant 0 : index
    %c0_1 = arith.constant 0 : index
    %c0_2 = arith.constant 0 : index
    %0 = vector.load %arg2[%c0, %c0_0, %c0_1, %c0_2] : memref<1x4x16x16xf32, #tpu.memory_space<vmem>>, vector<1x4x16x16xf32>
    %1 = vector.shape_cast %0 : vector<1x4x16x16xf32> to vector<4x16x16xf32>
    %c0_3 = arith.constant 0 : index
    %c0_4 = arith.constant 0 : index
    %c0_5 = arith.constant 0 : index
    %c0_6 = arith.constant 0 : index
    %2 = vector.load %arg3[%c0_3, %c0_4, %c0_5, %c0_6] : memref<1x1x16x16xf32, #tpu.memory_space<vmem>>, vector<1x1x16x16xf32>
    %3 = vector.shape_cast %2 : vector<1x1x16x16xf32> to vector<16x16xf32>
    %c0_7 = arith.constant 0 : index
    %c0_8 = arith.constant 0 : index
    %c0_9 = arith.constant 0 : index
    %c0_10 = arith.constant 0 : index
    %4 = vector.load %arg4[%c0_7, %c0_8, %c0_9, %c0_10] : memref<1x1x16x16xf32, #tpu.memory_space<vmem>>, vector<1x1x16x16xf32>
    %5 = vector.shape_cast %4 : vector<1x1x16x16xf32> to vector<16x16xf32>
    %6 = vector.shape_cast %1 : vector<4x16x16xf32> to vector<64x16xf32>
    %c0_11 = arith.constant 0 : index
    %c0_12 = arith.constant 0 : index
    %c0_13 = arith.constant 0 : index
    %7 = vector.load %arg5[%c0_11, %c0_12, %c0_13] : memref<3x16x12xf32, #tpu.memory_space<vmem>>, vector<1x16x12xf32>
    %8 = vector.shape_cast %7 : vector<1x16x12xf32> to vector<16x12xf32>
    %cst = arith.constant dense<0.000000e+00> : vector<64x12xf32>
    %9 = tpu.matmul %6, %8, %cst {dimension_numbers = #tpu.dot_dimension_numbers<[1], [0], [0], [1], [0, 0, 1, 1], [], []>} : vector<64x16xf32>, vector<16x12xf32>, vector<64x12xf32> -> vector<64x12xf32>
    %c0_14 = arith.constant 0 : index
    %c0_15 = arith.constant 0 : index
    %10 = vector.load %arg8[%c0_14, %c0_15] : memref<64x12xf32, #tpu.memory_space<vmem>>, vector<64x12xf32>
    tpu.vector_store %arg8[%c0_14, %c0_15], %9 {strides = array<i32>} : memref<64x12xf32, #tpu.memory_space<vmem>>, vector<64x12xf32>,
    %c0_16 = arith.constant 0 : index
    %c0_17 = arith.constant 0 : index
    %11 = vector.load %arg8[%c0_16, %c0_17] : memref<64x12xf32, #tpu.memory_space<vmem>>, vector<48x12xf32>
    %12 = vector.extract_strided_slice %1 {offsets = [1, 0, 0], sizes = [3, 16, 16], strides = [1, 1, 1]} : vector<4x16x16xf32> to vector<3x16x16xf32>
    %13 = vector.shape_cast %12 : vector<3x16x16xf32> to vector<48x16xf32>
    %c1 = arith.constant 1 : index
    %c0_18 = arith.constant 0 : index
    %c0_19 = arith.constant 0 : index
    %14 = vector.load %arg5[%c1, %c0_18, %c0_19] : memref<3x16x12xf32, #tpu.memory_space<vmem>>, vector<1x16x12xf32>
    %15 = vector.shape_cast %14 : vector<1x16x12xf32> to vector<16x12xf32>
    %cst_20 = arith.constant dense<0.000000e+00> : vector<48x12xf32>
    %16 = tpu.matmul %13, %15, %cst_20 {dimension_numbers = #tpu.dot_dimension_numbers<[1], [0], [0], [1], [0, 0, 1, 1], [], []>} : vector<48x16xf32>, vector<16x12xf32>, vector<48x12xf32> -> vector<48x12xf32>
    %17 = arith.addf %11, %16 : vector<48x12xf32>
    %c0_21 = arith.constant 0 : index
    %c0_22 = arith.constant 0 : index
    %18 = vector.load %arg8[%c0_21, %c0_22] : memref<64x12xf32, #tpu.memory_space<vmem>>, vector<48x12xf32>
    tpu.vector_store %arg8[%c0_21, %c0_22], %17 {strides = array<i32>} : memref<64x12xf32, #tpu.memory_space<vmem>>, vector<48x12xf32>,
    %c48 = arith.constant 48 : index
    %c0_23 = arith.constant 0 : index
    %19 = vector.load %arg8[%c48, %c0_23] : memref<64x12xf32, #tpu.memory_space<vmem>>, vector<16x12xf32>
    %c1_24 = arith.constant 1 : index
    %c0_25 = arith.constant 0 : index
    %c0_26 = arith.constant 0 : index
    %20 = vector.load %arg5[%c1_24, %c0_25, %c0_26] : memref<3x16x12xf32, #tpu.memory_space<vmem>>, vector<1x16x12xf32>
    %21 = vector.shape_cast %20 : vector<1x16x12xf32> to vector<16x12xf32>
    %cst_27 = arith.constant dense<0.000000e+00> : vector<16x12xf32>
    %22 = tpu.matmul %3, %21, %cst_27 {dimension_numbers = #tpu.dot_dimension_numbers<[1], [0], [0], [1], [0, 0, 1, 1], [], []>} : vector<16x16xf32>, vector<16x12xf32>, vector<16x12xf32> -> vector<16x12xf32>
    %23 = arith.addf %19, %22 : vector<16x12xf32>
    %c48_28 = arith.constant 48 : index
    %c0_29 = arith.constant 0 : index
    %24 = vector.load %arg8[%c48_28, %c0_29] : memref<64x12xf32, #tpu.memory_space<vmem>>, vector<16x12xf32>
    tpu.vector_store %arg8[%c48_28, %c0_29], %23 {strides = array<i32>} : memref<64x12xf32, #tpu.memory_space<vmem>>, vector<16x12xf32>,
    %c0_30 = arith.constant 0 : index
    %c0_31 = arith.constant 0 : index
    %25 = vector.load %arg8[%c0_30, %c0_31] : memref<64x12xf32, #tpu.memory_space<vmem>>, vector<32x12xf32>
    %26 = vector.extract_strided_slice %1 {offsets = [2, 0, 0], sizes = [2, 16, 16], strides = [1, 1, 1]} : vector<4x16x16xf32> to vector<2x16x16xf32>
    %27 = vector.shape_cast %26 : vector<2x16x16xf32> to vector<32x16xf32>
    %c2 = arith.constant 2 : index
    %c0_32 = arith.constant 0 : index
    %c0_33 = arith.constant 0 : index
    %28 = vector.load %arg5[%c2, %c0_32, %c0_33] : memref<3x16x12xf32, #tpu.memory_space<vmem>>, vector<1x16x12xf32>
    %29 = vector.shape_cast %28 : vector<1x16x12xf32> to vector<16x12xf32>
    %cst_34 = arith.constant dense<0.000000e+00> : vector<32x12xf32>
    %30 = tpu.matmul %27, %29, %cst_34 {dimension_numbers = #tpu.dot_dimension_numbers<[1], [0], [0], [1], [0, 0, 1, 1], [], []>} : vector<32x16xf32>, vector<16x12xf32>, vector<32x12xf32> -> vector<32x12xf32>
    %31 = arith.addf %25, %30 : vector<32x12xf32>
    %c0_35 = arith.constant 0 : index
    %c0_36 = arith.constant 0 : index
    %32 = vector.load %arg8[%c0_35, %c0_36] : memref<64x12xf32, #tpu.memory_space<vmem>>, vector<32x12xf32>
    tpu.vector_store %arg8[%c0_35, %c0_36], %31 {strides = array<i32>} : memref<64x12xf32, #tpu.memory_space<vmem>>, vector<32x12xf32>,
    %c32 = arith.constant 32 : index
    %c0_37 = arith.constant 0 : index
    %33 = vector.load %arg8[%c32, %c0_37] : memref<64x12xf32, #tpu.memory_space<vmem>>, vector<16x12xf32>
    %c2_38 = arith.constant 2 : index
    %c0_39 = arith.constant 0 : index
    %c0_40 = arith.constant 0 : index
    %34 = vector.load %arg5[%c2_38, %c0_39, %c0_40] : memref<3x16x12xf32, #tpu.memory_space<vmem>>, vector<1x16x12xf32>
    %35 = vector.shape_cast %34 : vector<1x16x12xf32> to vector<16x12xf32>
    %cst_41 = arith.constant dense<0.000000e+00> : vector<16x12xf32>
    %36 = tpu.matmul %3, %35, %cst_41 {dimension_numbers = #tpu.dot_dimension_numbers<[1], [0], [0], [1], [0, 0, 1, 1], [], []>} : vector<16x16xf32>, vector<16x12xf32>, vector<16x12xf32> -> vector<16x12xf32>
    %37 = arith.addf %33, %36 : vector<16x12xf32>
    %c32_42 = arith.constant 32 : index
    %c0_43 = arith.constant 0 : index
    %38 = vector.load %arg8[%c32_42, %c0_43] : memref<64x12xf32, #tpu.memory_space<vmem>>, vector<16x12xf32>
    tpu.vector_store %arg8[%c32_42, %c0_43], %37 {strides = array<i32>} : memref<64x12xf32, #tpu.memory_space<vmem>>, vector<16x12xf32>,
    %c48_44 = arith.constant 48 : index
    %c0_45 = arith.constant 0 : index
    %39 = vector.load %arg8[%c48_44, %c0_45] : memref<64x12xf32, #tpu.memory_space<vmem>>, vector<16x12xf32>
    %c2_46 = arith.constant 2 : index
    %c0_47 = arith.constant 0 : index
    %c0_48 = arith.constant 0 : index
    %40 = vector.load %arg5[%c2_46, %c0_47, %c0_48] : memref<3x16x12xf32, #tpu.memory_space<vmem>>, vector<1x16x12xf32>
    %41 = vector.shape_cast %40 : vector<1x16x12xf32> to vector<16x12xf32>
    %cst_49 = arith.constant dense<0.000000e+00> : vector<16x12xf32>
    %42 = tpu.matmul %5, %41, %cst_49 {dimension_numbers = #tpu.dot_dimension_numbers<[1], [0], [0], [1], [0, 0, 1, 1], [], []>} : vector<16x16xf32>, vector<16x12xf32>, vector<16x12xf32> -> vector<16x12xf32>
    %43 = arith.addf %39, %42 : vector<16x12xf32>
    %c48_50 = arith.constant 48 : index
    %c0_51 = arith.constant 0 : index
    %44 = vector.load %arg8[%c48_50, %c0_51] : memref<64x12xf32, #tpu.memory_space<vmem>>, vector<16x12xf32>
    tpu.vector_store %arg8[%c48_50, %c0_51], %43 {strides = array<i32>} : memref<64x12xf32, #tpu.memory_space<vmem>>, vector<16x12xf32>,
    %c0_52 = arith.constant 0 : index
    %c0_53 = arith.constant 0 : index
    %45 = vector.load %arg8[%c0_52, %c0_53] : memref<64x12xf32, #tpu.memory_space<vmem>>, vector<64x12xf32>
    %46 = vector.extract_strided_slice %45 {offsets = [0, 0], sizes = [64, 4], strides = [1, 1]} : vector<64x12xf32> to vector<64x4xf32>
    %47 = vector.extract_strided_slice %45 {offsets = [0, 4], sizes = [64, 4], strides = [1, 1]} : vector<64x12xf32> to vector<64x4xf32>
    %c63_i32 = arith.constant 63 : i32
    %48 = tpu.dynamic_rotate %47 by %c63_i32 dim 0 : vector<64x4xf32>, i32 -> vector<64x4xf32>
    %49 = arith.addf %46, %48 : vector<64x4xf32>
    %50 = vector.extract_strided_slice %45 {offsets = [0, 8], sizes = [64, 4], strides = [1, 1]} : vector<64x12xf32> to vector<64x4xf32>
    %c62_i32 = arith.constant 62 : i32
    %51 = tpu.dynamic_rotate %50 by %c62_i32 dim 0 : vector<64x4xf32>, i32 -> vector<64x4xf32>
    %52 = arith.addf %49, %51 : vector<64x4xf32>
    %c0_54 = arith.constant 0 : index
    %c0_55 = arith.constant 0 : index
    %53 = vector.load %arg6[%c0_54, %c0_55] : memref<1x4xf32, #tpu.memory_space<vmem>>, vector<1x4xf32>
    %54 = vector.broadcast %53 : vector<1x4xf32> to vector<64x4xf32>
    %55 = arith.addf %52, %54 : vector<64x4xf32>
    %56 = vector.shape_cast %55 : vector<64x4xf32> to vector<4x16x4xf32>
    %57 = vector.extract_strided_slice %56 {offsets = [0, 0, 0], sizes = [4, 8, 4], strides = [1, 1, 1]} : vector<4x16x4xf32> to vector<4x8x4xf32>
    %c0_56 = arith.constant 0 : index
    %c0_57 = arith.constant 0 : index
    %c0_58 = arith.constant 0 : index
    %c0_59 = arith.constant 0 : index
    %58 = vector.load %arg7[%c0_56, %c0_57, %c0_58, %c0_59] : memref<1x4x8x4xf32, #tpu.memory_space<vmem>>, vector<1x4x8x4xf32>
    %59 = vector.shape_cast %58 : vector<1x4x8x4xf32> to vector<4x8x4xf32>
    %60 = vector.shape_cast %57 : vector<4x8x4xf32> to vector<1x4x8x4xf32>
    tpu.vector_store %arg7[%c0_56, %c0_57, %c0_58, %c0_59], %60 {strides = array<i32>} : memref<1x4x8x4xf32, #tpu.memory_space<vmem>>, vector<1x4x8x4xf32>,
    return
  }
  func.func @transform_0(%arg0: i32, %arg1: i32) -> (i32, i32, i32, i32) {
    %c0_i32 = arith.constant 0 : i32
    %c0_i32_0 = arith.constant 0 : i32
    %c0_i32_1 = arith.constant 0 : i32
    return %arg0, %arg1, %c0_i32, %c0_i32_0 : i32, i32, i32, i32
  }
  func.func @transform_1(%arg0: i32, %arg1: i32) -> (i32, i32, i32, i32) {
    %c1_i32 = arith.constant 1 : i32
    %0 = arith.addi %arg1, %c1_i32 : i32
    %c4_i32 = arith.constant 4 : i32
    %1 = arith.muli %0, %c4_i32 : i32
    %c0_i32 = arith.constant 0 : i32
    %c0_i32_0 = arith.constant 0 : i32
    %c0_i32_1 = arith.constant 0 : i32
    return %arg0, %1, %c0_i32, %c0_i32_0 : i32, i32, i32, i32
  }
  func.func @transform_2(%arg0: i32, %arg1: i32) -> (i32, i32, i32, i32) {
    %c1_i32 = arith.constant 1 : i32
    %0 = arith.addi %arg1, %c1_i32 : i32
    %c4_i32 = arith.constant 4 : i32
    %1 = arith.muli %0, %c4_i32 : i32
    %c1_i32_0 = arith.constant 1 : i32
    %2 = arith.addi %1, %c1_i32_0 : i32
    %c0_i32 = arith.constant 0 : i32
    %c0_i32_1 = arith.constant 0 : i32
    %c0_i32_2 = arith.constant 0 : i32
    return %arg0, %2, %c0_i32, %c0_i32_1 : i32, i32, i32, i32
  }
  func.func @transform_3(%arg0: i32, %arg1: i32) -> (i32, i32, i32) {
    %c0_i32 = arith.constant 0 : i32
    %c0_i32_0 = arith.constant 0 : i32
    %c0_i32_1 = arith.constant 0 : i32
    %c0_i32_2 = arith.constant 0 : i32
    return %c0_i32, %c0_i32_0, %c0_i32_1 : i32, i32, i32
  }
  func.func @transform_4(%arg0: i32, %arg1: i32) -> (i32, i32) {
    %c0_i32 = arith.constant 0 : i32
    %c0_i32_0 = arith.constant 0 : i32
    %c0_i32_1 = arith.constant 0 : i32
    return %c0_i32, %c0_i32_0 : i32, i32
  }
  func.func @transform_5(%arg0: i32, %arg1: i32) -> (i32, i32, i32, i32) {
    %c0_i32 = arith.constant 0 : i32
    %c0_i32_0 = arith.constant 0 : i32
    %c0_i32_1 = arith.constant 0 : i32
    return %arg0, %arg1, %c0_i32, %c0_i32_0 : i32, i32, i32, i32
  }
}

</mosaic_0001>

<bundles_post_ra>
// kernel: tpu_custom_call.1
= control target key start
LH: loop header
LB: loop body
LE: loop exit
PB: predicated region body
PF: predicated region fallthrough
CT: control target
= control target key end

     0   :  { %s2300_s0 = inlined_call_operand.hbm [shape: f32[2,10,16,16], index: 0, kind: input, shape index: {}]   ;;  %s2301_s1 = inlined_call_operand.hbm [shape: f32[2,10,16,16], index: 1, kind: input, shape index: {}]   ;;  %s2302_s2 = inlined_call_operand.hbm [shape: f32[2,10,16,16], index: 2, kind: input, shape index: {}]   ;;  %s2303_s3 = inlined_call_operand.hbm [shape: f32[3,16,12], index: 3, kind: input, shape index: {}]   ;;  %s2304_s4 = inlined_call_operand.vmem [shape: f32[1,4], index: 4, kind: input, shape index: {}]   ;;  %s2305_s5 = inlined_call_operand.vmem [shape: f32[2,8,8,4], index: 5, kind: output, shape index: {}]  }
   0x1   :  { %2323 = sst [smem:[#allocation26_spill]] %s2300_s0 }
   0x2   :  { %2324 = sst [smem:[#allocation27_spill]] %s2303_s3 }
   0x3   :  { %2325 = sst [smem:[#allocation28_spill]] %s2304_s4 }
   0x4   :  { %2326 = sst [smem:[#allocation29_spill]] %s2305_s5 }
   0x5   :  { %10 = vsyncpa [#allocation4], 0 }
   0x6   :  { %12 = vsyncpa [#allocation4 + $0x1], 0 }
   0x7   :  { %13 = vsyncpa [#allocation6], 0 }
   0x8   :  { %15 = vsyncpa [#allocation6 + $0x1], 0 }
   0x9   :  { %16 = vsyncpa [#allocation9], 0  ;;  %s1898_s18 = smov 0   ;;  %s1900_s19 = smov 0  }
   0xa   :  { %s1902_s20 = smov 0   ;;  %s1904_s21 = smov 0  }
   0xb   :  { %s1906_s22 = smov 0   ;;  %s1908_s23 = smov 0  }
   0xc   :  { %s1910_s24 = smov 0   ;;  %s1912_s25 = smov 0  }
   0xd   :  { %s1914_s26 = smov 0   ;;  %s1916_s27 = smov 0  }
   0xe   :  { %s1918_s28 = smov 0   ;;  %s1920_s29 = smov 0  }
   0xf   :  { %s1922_s30 = smov 0   ;;  %s1924_s6 = smov 0  }
  0x10 LB: > { %2327 = sst [smem:[#allocation14_spill]] %s1822_s23  ;;  %s2306_s7 = sadd.s32 4294967295, %s1854_s6   ;;  %s1854_s6 = sphi %s1924_s6, %s22_s6   ;;  %s1850_s30 = sphi %s1922_s30, %s2381_s30   ;;  %s1846_s29 = sphi %s1920_s29, %s2380_s29   ;;  %s1842_s28 = sphi %s1918_s28, %s2379_s28   ;;  %s1838_s27 = sphi %s1916_s27, %s2378_s27   ;;  %s1834_s26 = sphi %s1914_s26, %s2377_s26   ;;  %s1830_s25 = sphi %s1912_s25, %s2376_s25   ;;  %s1826_s24 = sphi %s1910_s24, %s2375_s24   ;;  %s1822_s23 = sphi %s1908_s23, %s2365_s23   ;;  %s1818_s22 = sphi %s1906_s22, %s2374_s22   ;;  %s1814_s21 = sphi %s1904_s21, %s2373_s21   ;;  %s1810_s20 = sphi %s1902_s20, %s2372_s20   ;;  %s1806_s19 = sphi %s1900_s19, %s2371_s19   ;;  %s1802_s18 = sphi %s1898_s18, %s2370_s18  }
  0x11   : > { %2328 = sst [smem:[#allocation15_spill]] %s1834_s26  ;;  %s31_s8 = sadd.s32 1, %s1846_s29 }
  0x12   : > { %2329 = sst [smem:[#allocation16_spill]] %s1838_s27  ;;  %p32_p0 = scmp.ge.s32.totalorder %s31_s8, 2 }
  0x13   : > { %2330 = sst [smem:[#allocation17_spill]] %s1842_s28  ;;  %s34_s9 = sadd.s32 1, %s1850_s30 }
  0x14   : > { %s43_s10 = sadd.s32 1, %s1834_s26  ;;  %p50_p1 = scmp.ne.s32.totalorder %s1834_s26, %s1830_s25 }
  0x15   : > { %s2383_s8 = smov (%p32_p0, %s31_s8), 0  ;;  %s2385_s9 = smov (!%p32_p0, %s34_s9), %s1850_s30 }
  0x16   : > { %2331 = sst [smem:[#allocation18_spill]] %s2383_s8  ;;  %s39_s11 = ssub.s32 %s1846_s29, %s2383_s8 }
  0x17   : > { %p51_p2 = scmp.eq.s32.totalorder %s1854_s6, 0  ;;  %p36_p3 = scmp.ge.s32.totalorder %s2385_s9, 2 }
  0x18   : > { %p56_p4 = scmp.ne.s32.totalorder %s1830_s25, %s1826_s24  ;;  %p1987_p6 = scmp.eq.s32.totalorder %s2306_s7, 0 }
  0x19   : > { %p1981_p5 = por %p51_p2, %p50_p1  ;;  %s2387_s9 = smov (%p36_p3, %s2385_s9), 0 }
  0x1a   : > { %s2333_s13 = scalar_select %p1987_p6, 1, 0 }
  0x1b   : > { %2335 = sst [smem:[#allocation20_spill]] %s2387_s9  ;;  %p1995_p7 = por %p1987_p6, %p56_p4 }
  0x1c   : > { %2334 = sst [smem:[#allocation19_spill]] %s2333_s13  ;;  %s1374_s15 = sshll.u32 %s1846_s29, 2 }
  0x1d   : > { %s2336_s14 = scalar_select %p1995_p7, 1, 0 }
  0x1e   : > { %s38_s16 = ssub.s32 %s1850_s30, %s2387_s9  ;;  %s1375_s17 = sadd.s32 4, %s1374_s15 }
  0x1f   : > { %2337 = sst [smem:[#allocation21_spill]] %s2336_s14  ;;  %s40_s24 = sor.u32 %s39_s11, %s38_s16 }
  0x20   : > { %s1376_s7 = sshll.u32 %s2383_s8, 2  ;;  %p41_p8 = scmp.eq.s32.totalorder %s40_s24, 0 }
  0x21   : > { %s1377_s5 = sadd.s32 4, %s1376_s7  ;;  %s75_s28 = sadd.s32 1, %s1822_s23 }
  0x22   : > { %s71_s4 = ssub.s32 %s1375_s17, %s1377_s5  ;;  %p82_p9 = scmp.ne.s32.totalorder %s1822_s23, %s1818_s22 }
  0x23   : > { %s2005_s27 = scalar_select %p41_p8, %s1834_s26, %s43_s10  }
  0x24   : > { %s72_s14 = sor.u32 %s71_s4, %s38_s16  ;;  %p88_p11 = scmp.ne.s32.totalorder %s1818_s22, %s1814_s21 }
  0x25   : > { %2338 = sst [smem:[#allocation22_spill]] %s2005_s27  ;;  %p73_p10 = scmp.eq.s32.totalorder %s72_s14, 0 }
  0x26   : > { %p2013_p12 = por %p82_p9, %p51_p2  ;;  %s100_s11 = sadd.s32 1, %s1375_s17 }
  0x27   : > { %s2018_s15 = scalar_select %p73_p10, %s1822_s23, %s75_s28  }
  0x28   : > { %s2339_s7 = scalar_select %p2013_p12, 1, 0 }
  0x29   : > { %2340 = sst [smem:[#allocation23_spill]] %s2018_s15  ;;  %p2022_p13 = por %p88_p11, %p1987_p6 }
  0x2a   : > { %s103_s4 = sadd.s32 1, %s1377_s5  ;;  %s109_s14 = sadd.s32 1, %s1810_s20 }
  0x2b   : > { %s2341_s10 = scalar_select %p2022_p13, 1, 0 }
  0x2c   : > { %s105_s24 = ssub.s32 %s100_s11, %s103_s4  ;;  %p116_p0 = scmp.ne.s32.totalorder %s1810_s20, %s1806_s19 }
  0x2d   : > { %s106_s9 = sor.u32 %s105_s24, %s38_s16  ;;  %p122_p3 = scmp.ne.s32.totalorder %s1806_s19, %s1802_s18 }
  0x2e   : > { %p107_p1 = scmp.eq.s32.totalorder %s106_s9, 0  ;;  %p2033_p4 = por %p116_p0, %p51_p2 }
  0x2f   : > { %p1319_p8 = scmp.ge.s32.totalorder %s1854_s6, 1  ;;  %p2043_p9 = por %p122_p3, %p1987_p6 }
  0x30   : > { %s2342_s21 = scalar_select %p2033_p4, 1, 0 }
  0x31   : > { %s2039_s28 = scalar_select %p107_p1, %s1810_s20, %s109_s14  }
  0x32   : > { %s2344_s17 = scalar_select %p2043_p9, 1, 0 }
  0x33   : > { %2343 = sst [smem:[#allocation24_spill]] %s2039_s28  ;;  %p203_p10 = scmp.lt.s32.totalorder %s1854_s6, 5 }
  0x34   : > { %2345 = sst [smem:[#allocation25_spill]] %s2344_s17  ;;  %s1856_s18 = smov [#allocation8]  }
  0x35   : > { %p2048_p11 = pnand %p1319_p8, %p203_p10  ;;  %s215_s9 = sshll.u32 %s1856_s18, 4  ;;  %s216_s9 = int_to_ptr.vmem [resolvable:$true] %s215_s9 }
  0x36   : > { %s1631_s16 = scalar_lea.vmem %s216_s9, 768  ;;  %p1639_p4 = scmp.lt.s32.totalorder %s216_s9, %s216_s9 }
  0x37   : > { %p1493_p2 = pneg %p2048_p11  ;;  %p1632_p13 = scmp.ne.s32.totalorder %s216_s9, %s1631_s16 }
  0x38   : > { %p1640_p9 = scmp.lt.s32.totalorder %s1631_s16, %s1631_s16 }
  0x39   : > { %p1494_p0 = pnand %p1493_p2, %p1987_p6 }
  0x3a   : > { %p1641_p12 = por %p1640_p9, %p1639_p4 }
  0x3b   : > { %p1622_p1 = pneg %p1494_p0 }
  0x3d   : > { %p1634_p3 = pnand %p1632_p13, %p1622_p1 }
  0x3f   : > { %p1635_p7 = pneg %p1634_p3 }
  0x41   : > { %p1642_p8 = pnand %p1641_p12, %p1635_p7 }
  0x43   : > { %1645 = shalt.err (!%p1642_p8)
}
  0x44   : > { %s1857_s11 = smov 128   ;;  %s1858_s4 = smov 8  }
  0x45   : > { %s2347_s3 = sld [smem:[#allocation27_spill]]  ;;  %p1321_p10 = scmp.ge.s32.totalorder %s1854_s6, 4 }
  0x47   : > { %228 = sbr.rel (%p1321_p10) target bundleno = 139 (0x8b), region = 24 }
  0x4b   : > { %1496 = dma.hbm_to_vmem [thread:$0]  (!%p1494_p0), %s2347_s3, 768, %s216_s9, [#allocation9], %s1857_s11, %s1857_s11, %s1858_s4  }
  0x4c   : > { %231 = sbr.rel (!%p1981_p5) target bundleno = 105 (0x69), region = 28  ;;  %s232_s18 = sand.u32 (%p1981_p5), 1, %s1834_s26  }
  0x4d   : > { %s1322_s16 = sshll.u32 (%p1981_p5), %s232_s18, 6  ;;  %s2063_s8 = scalar_lea.sflag (%p1981_p5), [#allocation4], %s232_s18 }
  0x4e   : > { %s236_s27 = scalar_lea.vmem (%p1981_p5), [#allocation3], %s1322_s16  ;;  %s1383_s15 = sshll.u32 (%p1981_p5), %s1846_s29, 3 }
  0x4f   : > { %s1483_s28 = smul.u32 (%p1981_p5), 20, %s1850_s30  ;;  %s254_s13 = sshll.u32 (%p1981_p5), %s236_s27, 4  ;;  %s255_s13 = int_to_ptr.vmem [resolvable:$true] %s254_s13 }
  0x50   : > { %s2348_s0 = sld [smem:[#allocation26_spill]] (%p1981_p5) }
  0x51   : > { %s249_s24 = sadd.s32 %s1483_s28, %s1383_s15 }
  0x52   : > { %s1328_s9 = sshll.u32 %s249_s24, 7 }
  0x56   : > { %s251_s14 = scalar_lea.hbm %s2348_s0, %s1328_s9  ;;  %s1650_s26 = scalar_lea.hbm %s2348_s0, 5120 }
  0x57   : > { %s1646_s12 = scalar_lea.hbm %s251_s14, 1024 }
  0x58   : > { %p1647_p5 = scmp.ne.s32.totalorder %s251_s14, %s1646_s12  ;;  %p1652_p7 = scmp.lt.s32.totalorder %s1650_s26, %s1646_s12 }
  0x5a   : > { %p1654_p12 = pnand %p1652_p7, %p1647_p5 }
  0x5c   : > { %1657 = shalt.err (!%p1654_p12)
}
  0x5d   : > { %s1658_s18 = scalar_lea.vmem %s255_s13, 1024  ;;  %s1859_s16 = smov [#allocation3]  }
  0x5e   : > { %p1659_p13 = scmp.ne.s32.totalorder %s255_s13, %s1658_s18  ;;  %s1662_s27 = sshll.u32 %s1859_s16, 4  ;;  %s1663_s27 = int_to_ptr.vmem [resolvable:$false] %s1662_s27 }
  0x5f   : > { %s1664_s15 = scalar_lea.vmem %s1663_s27, 2048  ;;  %p1665_p4 = scmp.lt.s32.totalorder %s255_s13, %s1663_s27 }
  0x60   : > { %p1666_p9 = scmp.lt.s32.totalorder %s1664_s15, %s1658_s18 }
  0x62   : > { %p1667_p2 = por %p1666_p9, %p1665_p4 }
  0x64   : > { %p1668_p0 = pnand %p1667_p2, %p1659_p13 }
  0x66   : > { %1671 = shalt.err (!%p1668_p0)
}
  0x67   : > { %s1860_s28 = smov 128   ;;  %s1861_s24 = smov 8  }
  0x68   : > { %260 = dma.hbm_to_vmem [thread:$0]  %s251_s14, 1024, %s255_s13, %s2063_s8, %s1860_s28, %s1860_s28, %s1861_s24  }
  0x69 PF: > { %s266_s3 = sand.u32 1, %s1822_s23   ;;  %s264_s26 = sand.u32 1, %s1854_s6  }
  0x6a   : > { %s1332_s17 = sshll.u32 %s266_s3, 4  ;;  %s1333_s9 = sshll.u32 %s1846_s29, 3 }
  0x6b   : > { %s1202_s11 = smul.u32 20, %s1850_s30  ;;  %s268_s4 = scalar_lea.vmem [#allocation5], %s1332_s17 }
  0x6c   : > { %s279_s12 = sshll.u32 %s268_s4, 4  ;;  %s291_s13 = sand.u32 1, %s1810_s20   ;;  %s280_s12 = int_to_ptr.vmem [resolvable:$true] %s279_s12 }
  0x6d   : > { %s1203_s18 = sadd.s32 %s1333_s9, %s1202_s11  ;;  %s2087_s23 = scalar_lea.sflag [#allocation6], %s264_s26 }
  0x6e   : > { %s1334_s16 = sshll.u32 %s1203_s18, 7  ;;  %s1684_s3 = scalar_lea.vmem %s280_s12, 256 }
  0x6f   : > { %s1205_s8 = scalar_lea.hbm %s2301_s1, %s1334_s16  ;;  %s2085_s0 = scalar_lea.hbm %s2302_s2, %s1334_s16 }
  0x70   : > { %s1206_s14 = scalar_lea.hbm %s1205_s8, 1024  ;;  %p1685_p1 = scmp.ne.s32.totalorder %s280_s12, %s1684_s3 }
  0x71   : > { %p2349_p3 = scmp.ne.s32.totalorder %s2339_s7, 0  ;;  %s1862_s17 = smov [#allocation5]  }
  0x72   : > { %s1688_s9 = sshll.u32 %s1862_s17, 4  ;;  %s1689_s9 = int_to_ptr.vmem [resolvable:$false] %s1688_s9 }
  0x73   : > { %p1686_p8 = pnand %p1685_p1, %p2349_p3  ;;  %s1690_s11 = scalar_lea.vmem %s1689_s9, 512 }
  0x74   : > { %p1691_p5 = scmp.lt.s32.totalorder %s280_s12, %s1689_s9  ;;  %p1692_p7 = scmp.lt.s32.totalorder %s1690_s11, %s1684_s3 }
  0x75   : > { %p1687_p10 = pneg %p1686_p8 }
  0x76   : > { %p1693_p12 = por %p1692_p7, %p1691_p5 }
  0x78   : > { %p1694_p13 = pnand %p1693_p12, %p1687_p10 }
  0x7a   : > { %1697 = shalt.err (!%p1694_p13)
}
  0x7b   : > { %s1863_s4 = smov 128   ;;  %s1864_s26 = smov 8  }
  0x7c   : > { %1486 = dma.hbm_to_vmem [thread:$0]  (%p2349_p3), %s1206_s14, 256, %s280_s12, %s2087_s23, %s1863_s4, %s1863_s4, %s1864_s26  }
  0x7d   : > { %s1335_s18 = sshll.u32 %s291_s13, 4  ;;  %s1216_s16 = scalar_lea.hbm %s2085_s0, 1280 }
  0x7e   : > { %s293_s27 = scalar_lea.vmem [#allocation7], %s1335_s18  ;;  %p2350_p9 = scmp.ne.s32.totalorder %s2342_s21, 0 }
  0x7f   : > { %s305_s15 = sshll.u32 %s293_s27, 4  ;;  %s1865_s28 = smov [#allocation7]   ;;  %s306_s15 = int_to_ptr.vmem [resolvable:$true] %s305_s15 }
  0x80   : > { %s1711_s8 = scalar_lea.vmem %s306_s15, 256  ;;  %s1715_s24 = sshll.u32 %s1865_s28, 4  ;;  %s1716_s24 = int_to_ptr.vmem [resolvable:$false] %s1715_s24 }
  0x81   : > { %p1712_p4 = scmp.ne.s32.totalorder %s306_s15, %s1711_s8  ;;  %s1717_s3 = scalar_lea.vmem %s1716_s24, 512 }
  0x82   : > { %p1718_p1 = scmp.lt.s32.totalorder %s306_s15, %s1716_s24  ;;  %p1719_p8 = scmp.lt.s32.totalorder %s1717_s3, %s1711_s8 }
  0x83   : > { %p1713_p2 = pnand %p1712_p4, %p2350_p9 }
  0x84   : > { %p1720_p10 = por %p1719_p8, %p1718_p1 }
  0x85   : > { %p1714_p0 = pneg %p1713_p2 }
  0x87   : > { %p1721_p5 = pnand %p1720_p10, %p1714_p0 }
  0x89   : > { %1724 = shalt.err (!%p1721_p5)
}
  0x8a   : > { %1487 = dma.hbm_to_vmem [thread:$0]  (%p2350_p9), %s1216_s16, 256, %s306_s15, %s2087_s23, %s1863_s4, %s1863_s4, %s1864_s26  }
  0x8b PF: > { %317 = sbr.rel (%p2048_p11) target bundleno = 542 (0x21e), region = 40  ;;  %s2351_s0 = sld [smem:[#allocation21_spill]] (!%p2048_p11) }
  0x8c   : > { %s319_s7 = sand.u32 (!%p2048_p11), 1, %s1830_s25  }
  0x8d   : > { %s1340_s12 = sshll.u32 (!%p2048_p11), %s319_s7, 6  ;;  %s320_s13 = scalar_lea.sflag (!%p2048_p11), [#allocation4], %s319_s7 }
  0x8e   : > { %s2103_s14 = scalar_lea.vmem (!%p2048_p11), [#allocation3], %s1340_s12 }
  0x91   : > { %p2352_p3 = scmp.ne.s32.totalorder %s2351_s0, 0 }
  0x93   : > { %1783 = dma.done.wait (%p2352_p3), %s320_s13, 1024  }
  0x94   : > { %1785 = vsyncadd (%p2352_p3), %s320_s13, 4294966272  ;;  %s2353_s21 = sadd.s32 4294967295, %s1854_s6   ;;  %s330_s17 = sand.u32 1, %s1818_s22  }
  0x95   : > { %s328_s23 = sand.u32 1, %s2353_s21   ;;  %s2112_s5 = sshll.u32 %s330_s17, 4 }
  0x96   : > { %s329_s9 = scalar_lea.sflag [#allocation6], %s328_s23  ;;  %s332_s11 = scalar_lea.vmem [#allocation5], %s2112_s5 }
  0x97   : > { %p2354_p11 = scmp.ne.s32.totalorder %s2341_s10, 0 }
  0x99   : > { %1787 = dma.done.wait (%p2354_p11), %s329_s9, 256  }
  0x9a   : > { %1789 = vsyncadd (%p2354_p11), %s329_s9, 4294967040  ;;  %s2355_s4 = sld [smem:[#allocation25_spill]]  ;;  %s339_s26 = sand.u32 1, %s1806_s19  }
  0x9b   : > { %s2120_s18 = sshll.u32 %s339_s26, 4 }
  0x9c   : > { %s341_s16 = scalar_lea.vmem [#allocation7], %s2120_s18 }
  0xa0   : > { %p2356_p7 = scmp.ne.s32.totalorder %s2355_s4, 0 }
  0xa2   : > { %1791 = dma.done.wait (%p2356_p7), %s329_s9, 256  }
  0xa3   : > { %1793 = vsyncadd (%p2356_p7), %s329_s9, 4294967040 }
  0xa4   : > { %1795 = dma.done.wait (%p1987_p6), [#allocation9], 768  }
  0xa5   : > { %1797 = vsyncadd (%p1987_p6), [#allocation9], 4294966528  ;;  %vm421_vm0 = vcmask 130048   ;;  %v420_v0 = vld [vmem:[#allocation8 + $0x8] sm:$0xff]  ;;  %v419_v1 = vld [vmem:[#allocation8] sm:$0xff]  ;;  %vm551_vm1 = vcmask 97280  }
  0xa6   : > { %v407_v2 = vld [vmem:[%s2103_s14] sm:$0xff]  ;;  %1423 = vmatprep.subr.mxu0 %v420_v0  ;;  %v568_v3 = vld [vmem:[#allocation8 + $0x18] sm:$0xff]  ;;  %v408_v4 = vld [vmem:[%s2103_s14 + $0x8] sm:$0xff]  ;;  %s1866_s10 = smov 120   ;;  %s1867_s15 = smov 124   ;;  %vm1148_vm4 = vcmask 31744  }
  0xa7   : > { %1427 = vmatprep.mubr.msk.f32.mxu0 %vm421_vm0, %v407_v2  ;;  %1424 = vmatpush3.msra.mxu0 %v420_v0  ;;  %v771_v5 = vld [vmem:[#allocation8 + $0x28] sm:$0xff]  ;;  %v567_v6 = vld [vmem:[#allocation8 + $0x10] sm:$0xff]  ;;  %v770_v8 = vld [vmem:[#allocation8 + $0x20] sm:$0xff]  ;;  %s2358_s8 = sld [smem:[#allocation16_spill]] }
  0xa8   : > { %1439 = vmatprep.subr.mxu1 %v568_v3  ;;  %1425 = vmatprep.subr.mxu0 %v419_v1  ;;  %v409_v7 = vld [vmem:[%s2103_s14 + $0x10] sm:$0xff]  ;;  %v410_v9 = vld [vmem:[%s2103_s14 + $0x18] sm:$0xff]  ;;  %v411_v10 = vld [vmem:[%s2103_s14 + $0x20] sm:$0xff]  ;;  %s2359_s28 = sld [smem:[#allocation17_spill]] }
  0xa9   : > { %1440 = vmatpush3.msra.mxu1 %v568_v3  ;;  %1426 = vmatpush3.msra.mxu0 %v419_v1  ;;  %v412_v11 = vld [vmem:[%s2103_s14 + $0x28] sm:$0xff]  ;;  %v413_v12 = vld [vmem:[%s2103_s14 + $0x30] sm:$0xff]  ;;  %v414_v13 = vld [vmem:[%s2103_s14 + $0x38] sm:$0xff]  ;;  %s2360_s14 = sld [smem:[#allocation28_spill]] }
  0xaa   : > { %1441 = vmatprep.subr.mxu1 %v567_v6  ;;  %1428 = vmatmul.mubr.msk.f32.vlgmr.msra.gmra.mxu0 %vm421_vm0, %v408_v4  ;;  %v415_v14 = vld [vmem:[%s332_s11] sm:$0xff]  ;;  %v416_v15 = vld [vmem:[%s332_s11 + $0x8] sm:$0xff]  ;;  %s2361_s17 = sld [smem:[#allocation29_spill]] }
  0xab   : > { %1459 = vmatprep.subr.mxu0 %v771_v5  ;;  %1430 = vmatprep.mubr.msk.f32.mxu0 %vm421_vm0, %v409_v7  ;;  %v417_v16 = vld [vmem:[%s341_s16] sm:$0xff]  ;;  %v418_v17 = vld [vmem:[%s341_s16 + $0x8] sm:$0xff] }
  0xac   : > { %1460 = vmatpush3.msra.mxu0 %v771_v5  ;;  %1442 = vmatpush3.msra.mxu1 %v567_v6 }
  0xad   : > { %1443 = vmatprep.mubr.msk.f32.mxu1 %vm421_vm0, %v409_v7  ;;  %1461 = vmatprep.subr.mxu0 %v770_v8  ;;  %s1344_s24 = sshll.u32 %s2358_s8, 2 }
  0xae   : > { %1444 = vmatmul.mubr.msk.f32.vlgmr.msra.gmra.mxu1 %vm421_vm0, %v410_v9  ;;  %1431 = vmatmul.mubr.msk.f32.gmra.mxu0 %vm421_vm0, %v410_v9  ;;  %p398_p6 = scmp.lt.s32.totalorder %s2359_s28, 1  ;;  %p400_p12 = scmp.lt.s32.totalorder %s1344_s24, 7 }
  0xaf   : > { %1446 = vmatprep.mubr.msk.f32.mxu1 %vm421_vm0, %v411_v10  ;;  %1433 = vmatprep.mubr.msk.f32.mxu0 %vm421_vm0, %v411_v10 }
  0xb0   : > { %1462 = vmatpush3.msra.mxu0 %v770_v8  ;;  %1452 = vmatprep.subr.mxu1 %v568_v3  ;;  %s2389_s28 = smov (!%p398_p6, %s2359_s28), 1  ;;  %s2391_s24 = smov (!%p400_p12, %s1344_s24), 7 }
  0xb1   : > { %1453 = vmatpush3.msra.mxu1 %v568_v3  ;;  %s1345_s3 = sshll.u32 %s2389_s28, 3 }
  0xb2   : > { %1447 = vmatmul.mubr.msk.f32.gmra.mxu1 %vm421_vm0, %v412_v11  ;;  %1434 = vmatmul.mubr.msk.f32.gmra.mxu0 %vm421_vm0, %v412_v11  ;;  %s403_s0 = sadd.s32 %s1345_s3, %s2391_s24 }
  0xb3   : > { %1449 = vmatprep.mubr.msk.f32.mxu1 %vm421_vm0, %v413_v12  ;;  %1436 = vmatprep.mubr.msk.f32.mxu0 %vm421_vm0, %v413_v12  ;;  %s1346_s7 = sshll.u32 %s403_s0, 3 }
  0xb4   : > { %1454 = vmatprep.subr.mxu1 %v567_v6  ;;  %s2228_s5 = scalar_lea.vmem %s2361_s17, %s1346_s7 }
  0xb5   : > { %1455 = vmatpush3.msra.mxu1 %v567_v6 }
  0xb6   : > { %1450 = vmatmul.mubr.msk.f32.gmra.mxu1 %vm421_vm0, %v414_v13  ;;  %1437 = vmatmul.mubr.msk.f32.gmra.mxu0 %vm421_vm0, %v414_v13 }
  0xb7   : > { %1463 = vmatprep.mubr.msk.f32.mxu0 %vm421_vm0, %v411_v10  ;;  %1456 = vmatprep.mubr.msk.f32.mxu1 %vm421_vm0, %v415_v14 }
  0xb8   : > { %1469 = vmatprep.subr.mxu1 %v771_v5 }
  0xba   : > { %1457 = vmatmul.mubr.msk.f32.vlgmr.msra.gmra.mxu1 %vm421_vm0, %v416_v15  ;;  %1464 = vmatmul.mubr.msk.f32.vlgmr.msra.gmra.mxu0 %vm421_vm0, %v412_v11 }
  0xbb   : > { %1470 = vmatpush3.msra.mxu1 %v771_v5  ;;  %1466 = vmatprep.mubr.msk.f32.mxu0 %vm421_vm0, %v413_v12 }
  0xbc   : > { %1471 = vmatprep.subr.mxu1 %v770_v8  ;;  %1473 = vmatprep.mubr.msk.f32.mxu1 %vm421_vm0, %v415_v14 }
  0xbd   : > { %1472 = vmatpush3.msra.mxu1 %v770_v8 }
  0xbe   : > { %1474 = vmatmul.mubr.msk.f32.vlgmr.msra.gmra.mxu1 %vm421_vm0, %v416_v15  ;;  %1476 = vmatprep.subr.mxu1 %v771_v5 }
  0xbf   : > { %1467 = vmatmul.mubr.msk.f32.gmra.mxu0 %vm421_vm0, %v414_v13  ;;  %1477 = vmatpush3.msra.mxu1 %v771_v5 }
  0xc0   : > { %1478 = vmatprep.subr.mxu1 %v770_v8  ;;  %1480 = vmatprep.mubr.msk.f32.mxu1 %vm421_vm0, %v417_v16 }
  0xc1   : > { %1479 = vmatpush3.msra.mxu1 %v770_v8 }
  0xc2   : > { %1481 = vmatmul.mubr.msk.f32.vlgmr.msra.gmra.mxu1 %vm421_vm0, %v418_v17 }
 0x16a   : > { %v1429_v18 = vpop.f32.mrf.mxu0 }
 0x16b   : > { %553 = vst.msk [vmem:[#allocation2 + $0x8] sm:$0xff] %vm551_vm1, %v1429_v18  ;;  %v1085_v18 = vlaneseq }
 0x16c   : > { %v512_v19 = vpop.f32.mrf.mxu0 }
 0x16d   : > { %552 = vst.msk [vmem:[#allocation2] sm:$0xff] %vm551_vm1, %v512_v19 }
 0x16e   : > { %v1445_v20 = vpop.f32.mrf.mxu1  ;;  %v1432_v21 = vpop.f32.mrf.mxu0 }
 0x16f   : > { %555 = vst.msk [vmem:[#allocation2 + $0x18] sm:$0xff] %vm551_vm1, %v1432_v21  ;;  %v2213_v21 = vshrl.u32 %v1085_v18, 7 }
 0x170   : > { %v635_v22 = vpop.f32.mrf.mxu1  ;;  %v522_v23 = vpop.f32.mrf.mxu0 }
 0x171   : > { %554 = vst.msk [vmem:[#allocation2 + $0x10] sm:$0xff] %vm551_vm1, %v522_v23  ;;  %vm1087_vm2 = vcmp.lt.s32.totalorder %v2213_v21, 7  ;;  %vm1128_vm3 = vcmp.lt.s32.totalorder %v2213_v21, 6 }
 0x172   : > { %v1448_v24 = vpop.f32.mrf.mxu1  ;;  %v561_v25 = vld [vmem:[#allocation2 + $0x8] sm:$0xff]  ;;  %v1435_v26 = vpop.f32.mrf.mxu0 }
 0x173   : > { %v665_v27 = vadd.f32 %v1445_v20, %v561_v25  ;;  %557 = vst.msk [vmem:[#allocation2 + $0x28] sm:$0xff] %vm551_vm1, %v1435_v26 }
 0x174   : > { %v645_v28 = vpop.f32.mrf.mxu1  ;;  %v560_v29 = vld [vmem:[#allocation2] sm:$0xff]  ;;  %v532_v30 = vpop.f32.mrf.mxu0 }
 0x175   : > { %671 = vst.msk [vmem:[#allocation2 + $0x8] sm:$0xff] %vm551_vm1, %v665_v27  ;;  %v664_v31 = vadd.f32 %v635_v22, %v560_v29  ;;  %556 = vst.msk [vmem:[#allocation2 + $0x20] sm:$0xff] %vm551_vm1, %v532_v30 }
 0x176   : > { %v1451_v32 = vpop.f32.mrf.mxu1  ;;  %v563_v33 = vld [vmem:[#allocation2 + $0x18] sm:$0xff]  ;;  %v1438_v34 = vpop.f32.mrf.mxu0 }
 0x177   : > { %670 = vst.msk [vmem:[#allocation2] sm:$0xff] %vm551_vm1, %v664_v31  ;;  %v667_v35 = vadd.f32 %v1448_v24, %v563_v33  ;;  %559 = vst.msk [vmem:[#allocation2 + $0x38] sm:$0xff] %vm551_vm1, %v1438_v34 }
 0x178   : > { %v655_v36 = vpop.f32.mrf.mxu1  ;;  %v562_v37 = vld [vmem:[#allocation2 + $0x10] sm:$0xff]  ;;  %v542_v38 = vpop.f32.mrf.mxu0 }
 0x179   : > { %673 = vst.msk [vmem:[#allocation2 + $0x18] sm:$0xff] %vm551_vm1, %v667_v35  ;;  %v666_v39 = vadd.f32 %v645_v28, %v562_v37  ;;  %558 = vst.msk [vmem:[#allocation2 + $0x30] sm:$0xff] %vm551_vm1, %v542_v38 }
 0x17a   : > { %v1458_v40 = vpop.f32.mrf.mxu1  ;;  %v565_v41 = vld [vmem:[#allocation2 + $0x28] sm:$0xff]  ;;  %v1465_v42 = vpop.f32.mrf.mxu0 }
 0x17b   : > { %672 = vst.msk [vmem:[#allocation2 + $0x10] sm:$0xff] %vm551_vm1, %v666_v39  ;;  %v669_v43 = vadd.f32 %v1451_v32, %v565_v41  ;;  %v1371_v32 = vld [vmem:[%s2360_s14] ss:$0 sm:$0xff] }
 0x17c   : > { %v752_v44 = vpop.f32.mrf.mxu1  ;;  %v766_v45 = vld [vmem:[#allocation2 + $0x8] sm:$0xff]  ;;  %v564_v46 = vld [vmem:[#allocation2 + $0x20] sm:$0xff]  ;;  %v838_v47 = vpop.f32.mrf.mxu0 }
 0x17d   : > { %675 = vst.msk [vmem:[#allocation2 + $0x28] sm:$0xff] %vm551_vm1, %v669_v43  ;;  %v858_v48 = vadd.f32 %v1465_v42, %v766_v45  ;;  %v668_v49 = vadd.f32 %v655_v36, %v564_v46 }
 0x17e   : > { %v1475_v50 = vpop.f32.mrf.mxu1  ;;  %v765_v51 = vld [vmem:[#allocation2] sm:$0xff]  ;;  %v677_v52 = vld [vmem:[#allocation2 + $0x38] sm:$0xff] }
 0x17f   : > { %v1468_v53 = vpop.f32.mrf.mxu0  ;;  %862 = vst.msk [vmem:[#allocation2 + $0x8] sm:$0xff] %vm551_vm1, %v858_v48  ;;  %674 = vst.msk [vmem:[#allocation2 + $0x20] sm:$0xff] %vm551_vm1, %v668_v49  ;;  %v857_v54 = vadd.f32 %v838_v47, %v765_v51  ;;  %v762_v55 = vadd.f32 %v1458_v40, %v677_v52 }
 0x180   : > { %v768_v56 = vld [vmem:[#allocation2 + $0x18] sm:$0xff]  ;;  %v676_v57 = vld [vmem:[#allocation2 + $0x30] sm:$0xff]  ;;  %v935_v58 = vpop.f32.mrf.mxu1 }
 0x181   : > { %861 = vst.msk [vmem:[#allocation2] sm:$0xff] %vm551_vm1, %v857_v54  ;;  %764 = vst.msk [vmem:[#allocation2 + $0x38] sm:$0xff] %vm551_vm1, %v762_v55  ;;  %v860_v59 = vadd.f32 %v1468_v53, %v768_v56  ;;  %v761_v60 = vadd.f32 %v752_v44, %v676_v57  ;;  %v848_v62 = vpop.f32.mrf.mxu0 }
 0x182   : > { %v767_v61 = vld [vmem:[#allocation2 + $0x10] sm:$0xff]  ;;  %v1482_v1 = vpop.f32.mrf.mxu1 }
 0x183   : > { %864 = vst.msk [vmem:[#allocation2 + $0x18] sm:$0xff] %vm551_vm1, %v860_v59  ;;  %763 = vst.msk [vmem:[#allocation2 + $0x30] sm:$0xff] %vm551_vm1, %v761_v60  ;;  %v859_v63 = vadd.f32 %v848_v62, %v767_v61 }
 0x184   : > { %v866_v0 = vld [vmem:[#allocation2 + $0x28] sm:$0xff]  ;;  %v1024_v7 = vpop.f32.mrf.mxu1 }
 0x185   : > { %863 = vst.msk [vmem:[#allocation2 + $0x10] sm:$0xff] %vm551_vm1, %v859_v63  ;;  %v945_v2 = vadd.f32 %v1475_v50, %v866_v0 }
 0x186   : > { %v865_v3 = vld [vmem:[#allocation2 + $0x20] sm:$0xff]  ;;  %v1038_v4 = vld [vmem:[#allocation2 + $0x8] sm:$0xff] }
 0x187   : > { %947 = vst.msk [vmem:[#allocation2 + $0x28] sm:$0xff] %vm551_vm1, %v945_v2  ;;  %v944_v5 = vadd.f32 %v935_v58, %v865_v3  ;;  %1098 = vrot.lane.b32.xlu1 %v1038_v4, %s1866_s10  ;;  %1055 = vrot.lane.b32.xlu0 %v1038_v4, %s1867_s15 }
 0x188   : > { %v949_v6 = vld [vmem:[#allocation2 + $0x38] sm:$0xff]  ;;  %v1037_v10 = vld [vmem:[#allocation2] sm:$0xff] }
 0x189   : > { %946 = vst.msk [vmem:[#allocation2 + $0x20] sm:$0xff] %vm551_vm1, %v944_v5  ;;  %v1034_v8 = vadd.f32 %v1482_v1, %v949_v6 }
 0x18a   : > { %v948_v9 = vld [vmem:[#allocation2 + $0x30] sm:$0xff]  ;;  %v1040_v11 = vld [vmem:[#allocation2 + $0x18] sm:$0xff] }
 0x18b   : > { %1036 = vst.msk [vmem:[#allocation2 + $0x38] sm:$0xff] %vm551_vm1, %v1034_v8  ;;  %v1033_v12 = vadd.f32 %v1024_v7, %v948_v9  ;;  %1053 = vrot.lane.b32.xlu0 %v1037_v10, %s1867_s15  ;;  %1059 = vrot.lane.b32.xlu1 %v1040_v11, %s1867_s15 }
 0x18c   : > { %v1039_v13 = vld [vmem:[#allocation2 + $0x10] sm:$0xff] }
 0x18d   : > { %1035 = vst.msk [vmem:[#allocation2 + $0x30] sm:$0xff] %vm551_vm1, %v1033_v12 }
 0x18e   : > { %v1042_v15 = vld [vmem:[#allocation2 + $0x28] sm:$0xff] }
 0x18f   : > { %1096 = vrot.lane.b32.xlu0 %v1037_v10, %s1866_s10  ;;  %1102 = vrot.lane.b32.xlu1 %v1040_v11, %s1866_s10 }
 0x190   : > { %v2199_v14 = vld [vmem:[#allocation2 + $0x20] sm:$0xff] }
 0x192   : > { %v1044_v16 = vld [vmem:[#allocation2 + $0x38] sm:$0xff] }
 0x193   : > { %1100 = vrot.lane.b32.xlu0 %v1039_v13, %s1866_s10  ;;  %1057 = vrot.lane.b32.xlu1 %v1039_v13, %s1867_s15 }
 0x194   : > { %v2205_v17 = vld [vmem:[#allocation2 + $0x30] sm:$0xff] }
 0x197   : > { %1061 = vrot.lane.b32.xlu0 %v2199_v14, %s1867_s15  ;;  %1063 = vrot.lane.b32.xlu1 %v1042_v15, %s1867_s15 }
 0x19b   : > { %1104 = vrot.lane.b32.xlu0 %v2199_v14, %s1866_s10  ;;  %1106 = vrot.lane.b32.xlu1 %v1042_v15, %s1866_s10 }
 0x19f   : > { %1067 = vrot.lane.b32.xlu1 %v1044_v16, %s1867_s15  ;;  %1065 = vrot.lane.b32.xlu0 %v2205_v17, %s1867_s15 }
 0x1a3   : > { %1110 = vrot.lane.b32.xlu1 %v1044_v16, %s1866_s10  ;;  %1108 = vrot.lane.b32.xlu0 %v2205_v17, %s1866_s10 }
 0x1f9   : > { %v1099_v19 = vpop.permute.xlu1 %1098  ;;  %v1056_v20 = vpop.permute.xlu0 %1055 }
 0x1fa   : > { %v1078_v24 = vrot.slane %v1056_v20, 1  ;;  %v1121_v29 = vrot.slane %v1099_v19, 2 }
 0x1fd   : > { %v1054_v22 = vpop.permute.xlu0 %1053  ;;  %v1060_v23 = vpop.permute.xlu1 %1059 }
 0x1fe   : > { %v1077_v25 = vrot.slane %v1054_v22, 1  ;;  %v1080_v37 = vrot.slane %v1060_v23, 1 }
 0x200   : > { %v1091_v26 = vsel %vm1087_vm2, %v1077_v25, %v1078_v24 }
 0x201   : > { %v1097_v27 = vpop.permute.xlu0 %1096  ;;  %v1103_v28 = vpop.permute.xlu1 %1102  ;;  %v1092_v31 = vadd.f32 %v1091_v26, %v1037_v10 }
 0x202   : > { %v1120_v30 = vrot.slane %v1097_v27, 2  ;;  %v1123_v41 = vrot.slane %v1103_v28, 2 }
 0x204   : > { %v1132_v33 = vsel %vm1128_vm3, %v1120_v30, %v1121_v29 }
 0x205   : > { %v1133_v34 = vadd.f32 %v1132_v33, %v1092_v31  ;;  %v1101_v35 = vpop.permute.xlu0 %1100  ;;  %v1058_v36 = vpop.permute.xlu1 %1057 }
 0x206   : > { %v1122_v38 = vrot.slane %v1101_v35, 2  ;;  %v1079_v39 = vrot.slane %v1058_v36, 1 }
 0x207   : > { %v1144_v40 = vadd.f32 %v1371_v32, %v1133_v34 }
 0x208   : > { %v1090_v42 = vsel %vm1087_vm2, %v1079_v39, %v1080_v37  ;;  %v1131_v46 = vsel %vm1128_vm3, %v1122_v38, %v1123_v41 }
 0x209   : > { %1149 = vst.msk [vmem:[%s2228_s5] sm:$0xff] %vm1148_vm4, %v1144_v40  ;;  %v1093_v43 = vadd.f32 %v1090_v42, %v1039_v13  ;;  %v1062_v44 = vpop.permute.xlu0 %1061  ;;  %v1064_v45 = vpop.permute.xlu1 %1063 }
 0x20a   : > { %v1081_v47 = vrot.slane %v1062_v44, 1  ;;  %v1082_v48 = vrot.slane %v1064_v45, 1 }
 0x20b   : > { %v1134_v49 = vadd.f32 %v1131_v46, %v1093_v43 }
 0x20c   : > { %v1089_v50 = vsel %vm1087_vm2, %v1081_v47, %v1082_v48 }
 0x20d   : > { %v1145_v51 = vadd.f32 %v1371_v32, %v1134_v49  ;;  %v1105_v52 = vpop.permute.xlu0 %1104  ;;  %v1107_v53 = vpop.permute.xlu1 %1106  ;;  %v1094_v56 = vadd.f32 %v1089_v50, %v2199_v14 }
 0x20e   : > { %v1124_v54 = vrot.slane %v1105_v52, 2  ;;  %v1125_v55 = vrot.slane %v1107_v53, 2 }
 0x20f   : > { %1150 = vst.msk [vmem:[%s2228_s5 + $0x8] sm:$0xff] %vm1148_vm4, %v1145_v51 }
 0x210   : > { %v1130_v57 = vsel %vm1128_vm3, %v1124_v54, %v1125_v55 }
 0x211   : > { %v1135_v58 = vadd.f32 %v1130_v57, %v1094_v56  ;;  %v1068_v59 = vpop.permute.xlu1 %1067  ;;  %v1066_v60 = vpop.permute.xlu0 %1065 }
 0x212   : > { %v1084_v61 = vrot.slane %v1068_v59, 1  ;;  %v1083_v62 = vrot.slane %v1066_v60, 1 }
 0x213   : > { %v1146_v63 = vadd.f32 %v1371_v32, %v1135_v58 }
 0x214   : > { %v1088_v0 = vsel %vm1087_vm2, %v1083_v62, %v1084_v61 }
 0x215   : > { %1151 = vst.msk [vmem:[%s2228_s5 + $0x10] sm:$0xff] %vm1148_vm4, %v1146_v63  ;;  %v1111_v1 = vpop.permute.xlu1 %1110  ;;  %v1109_v2 = vpop.permute.xlu0 %1108  ;;  %v1095_v5 = vadd.f32 %v1088_v0, %v2205_v17 }
 0x216   : > { %v1127_v3 = vrot.slane %v1111_v1, 2  ;;  %v1126_v4 = vrot.slane %v1109_v2, 2 }
 0x218   : > { %v1129_v6 = vsel %vm1128_vm3, %v1126_v4, %v1127_v3 }
 0x219   : > { %v1136_v7 = vadd.f32 %v1129_v6, %v1095_v5 }
 0x21b   : > { %v1147_v8 = vadd.f32 %v1371_v32, %v1136_v7 }
 0x21d   : > { %1152 = vst.msk [vmem:[%s2228_s5 + $0x18] sm:$0xff] %vm1148_vm4, %v1147_v8 }
 0x21e PF: > { %s22_s6 = sadd.s32 1, %s1854_s6   ;;  %s2363_s11 = sld [smem:[#allocation24_spill]] }
 0x21f   : > { %p2253_p13 = scmp.ge.s32.totalorder %s22_s6, 6   ;;  %s2364_s4 = sld [smem:[#allocation14_spill]] }
 0x220   : > { %s2365_s23 = sld [smem:[#allocation23_spill]]  ;;  %s2370_s18 = smov %s1806_s19 }
 0x221   : > { %s2366_s26 = sld [smem:[#allocation15_spill]]  ;;  %s2371_s19 = smov %s1810_s20 }
 0x222   : > { %s2367_s16 = sld [smem:[#allocation22_spill]]  ;;  %s2373_s21 = smov %s1818_s22 }
 0x223   : > { %s2368_s10 = sld [smem:[#allocation18_spill]]  ;;  %s2375_s24 = smov %s1830_s25 }
 0x224   : > { %s2369_s15 = sld [smem:[#allocation20_spill]]  ;;  %s2372_s20 = smov %s2363_s11 }
 0x225   : > { %s2374_s22 = smov %s2364_s4  ;;  %s2378_s27 = smov %s1846_s29 }
 0x226   : > { %s2379_s28 = smov %s1850_s30  ;;  %21 = sbr.rel (!%p2253_p13) target bundleno = 16 (0x10), region = 110 }
 0x227   : > { %s2376_s25 = smov %s2366_s26 }
 0x228   : > { %s2377_s26 = smov %s2367_s16 }
 0x229   : > { %s2380_s29 = smov %s2368_s10 }
 0x22a   : > { %s2381_s30 = smov %s2369_s15 }
 0x22b   :  { %1183 = vsyncpa [#allocation4], 1 }
 0x22c   :  { %1185 = vsyncpa [#allocation4 + $0x1], 1 }
 0x22d   :  { %1186 = vsyncpa [#allocation6], 1 }
 0x22e   :  { %1188 = vsyncpa [#allocation6 + $0x1], 1 }
 0x22f   :  { %1189 = vsyncpa [#allocation9], 1 }

</bundles_post_ra>
